<compile_context>
chip_gen: v5e
topology: v5e:2x2
jax: 0.10.0
libtpu: 0.0.40
codegen_flags: <defaults>
</compile_context>

<pallas_src>
import functools

import jax
import jax.numpy as jnp
from jax import lax
from jax.experimental import pallas as pl
from jax.experimental.pallas import tpu as pltpu


def _fused_two_model_kernel(p_ref, w1_ref, b1_ref, w2_ref, b2_ref,
                            o1_ref, o2_ref):
    """One grid step = both models, whole batch (batch folded onto lanes).

    p_ref  : (N, 9*Cin, HW)           im2col patches, HW on the lane axis
    w1_ref : (2*C1, 9*Cin)            3x3 stem weights of BOTH models (BN folded)
    b1_ref : (2*C1, 1)                folded stem bias of both models
    w2_ref : (Cout1_pad + Cout2, 2*C1) block-diagonal fused 1x1 head weights
    b2_ref : (Cout1_pad + Cout2, 1)   fused head bias
    o1_ref : (N, Cout1, HW)           model-1 output (NCHW with HW flattened)
    o2_ref : (N, Cout2, HW)           model-2 output
    """
    n_batch = p_ref.shape[0]
    hw = o1_ref.shape[2]
    cout1 = o1_ref.shape[1]
    cout2 = o2_ref.shape[1]
    cout1_pad = w2_ref.shape[0] - cout2

    # Fold the batch onto the lane axis: (9*Cin, N*HW).  Each piece is a
    # 128-aligned 256-lane block, so the concat stays tile-aligned.
    patches = jnp.concatenate([p_ref[n] for n in range(n_batch)], axis=-1)

    # Fused 3x3 'same' conv stem of both models: ONE wide MXU matmul.
    acc = jnp.dot(w1_ref[...], patches,
                  preferred_element_type=jnp.float32)        # (2*C1, N*HW)
    acc = acc + b1_ref[...]

    # SiLU (YOLOX BaseConv act) with an exact sigmoid: single EUP tanh.
    hidden = acc * (0.5 * jnp.tanh(0.5 * acc) + 0.5)

    # Both 1x1 detection heads as one block-diagonal matmul.  Model-1 rows are
    # zero-padded up to a multiple of 8 so the o1/o2 row split lands on a
    # sublane-tile boundary (copy-free slicing).
    head = jnp.dot(w2_ref[...], hidden,
                   preferred_element_type=jnp.float32)       # (rows2, N*HW)
    head = head + b2_ref[...]

    # Per-image stores: static, 128-aligned lane slices -> (N, Cout, HW).
    for n in range(n_batch):
        lo, hi = n * hw, (n + 1) * hw
        o1_ref[n, :, :] = head[:cout1, lo:hi].astype(o1_ref.dtype)
        o2_ref[n, :, :] = head[cout1_pad:, lo:hi].astype(o2_ref.dtype)


@functools.partial(jax.jit, static_argnames=("cout1", "cout2"))
def load_model_forward(x_nchw, w1_all, b1_all, w2_fused, b2_fused, *,
                       cout1, cout2):
    """Equivalent of load_model.forward: run both models on x, return tuple."""
    N, Cin, H, W = x_nchw.shape
    HW = H * W
    K = 9 * Cin
    two_c1 = w1_all.shape[0]
    rows2 = w2_fused.shape[0]

    # Single-op im2col (3x3, 'same').  Feature dim is Cin-major / tap-minor,
    # which matches torch Conv2d weight.reshape(Cout, -1) for real checkpoints.
    patches = lax.conv_general_dilated_patches(
        x_nchw.astype(jnp.float32), filter_shape=(3, 3),
        window_strides=(1, 1), padding="SAME",
        dimension_numbers=("NCHW", "OIHW", "NCHW"),
        precision=lax.Precision.HIGHEST)                      # (N, 9*Cin, H, W)
    patches = patches.reshape(N, K, HW)

    out1_flat, out2_flat = pl.pallas_call(
        _fused_two_model_kernel,
        out_shape=(jax.ShapeDtypeStruct((N, cout1, HW), jnp.float32),
                   jax.ShapeDtypeStruct((N, cout2, HW), jnp.float32)),
        grid=(1,),
        in_specs=[
            pl.BlockSpec((N, K, HW), lambda i: (0, 0, 0)),
            pl.BlockSpec((two_c1, K), lambda i: (0, 0)),
            pl.BlockSpec((two_c1, 1), lambda i: (0, 0)),
            pl.BlockSpec((rows2, two_c1), lambda i: (0, 0)),
            pl.BlockSpec((rows2, 1), lambda i: (0, 0)),
        ],
        out_specs=(
            pl.BlockSpec((N, cout1, HW), lambda i: (0, 0, 0)),
            pl.BlockSpec((N, cout2, HW), lambda i: (0, 0, 0)),
        ),
        compiler_params=pltpu.CompilerParams(
            dimension_semantics=("arbitrary",),
            vmem_limit_bytes=32 * 1024 * 1024,
        ),
    )(patches, w1_all, b1_all, w2_fused, b2_fused)

    # (N, Cout, HW) is already channel-major; just unflatten HW -> (H, W).
    return (out1_flat.reshape(N, cout1, H, W),
            out2_flat.reshape(N, cout2, H, W))


def fuse_params(params1, params2):
    """Pre-fuse both models' weights ONCE (hoisted out of the forward path)."""
    w1a, b1a, w2a, b2a = params1
    w1b, b1b, w2b, b2b = params2
    c1 = w1a.shape[0]
    cout1, cout2 = w2a.shape[0], w2b.shape[0]
    cout1_pad = -(-cout1 // 8) * 8                  # pad to an 8-sublane tile

    w1_all = jnp.concatenate([w1a, w1b], axis=0)    # (2*C1, 9*Cin)
    b1_all = jnp.concatenate([b1a, b1b], axis=0)    # (2*C1, 1)

    w2_fused = jnp.zeros((cout1_pad + cout2, 2 * c1), jnp.float32)
    w2_fused = w2_fused.at[:cout1, :c1].set(w2a)
    w2_fused = w2_fused.at[cout1_pad:, c1:].set(w2b)
    b2_fused = jnp.zeros((cout1_pad + cout2, 1), jnp.float32)
    b2_fused = b2_fused.at[:cout1, :].set(b2a)
    b2_fused = b2_fused.at[cout1_pad:, :].set(b2b)
    return w1_all, b1_all, w2_fused, b2_fused


def _make_params(key, cin, c1, cout):
    """Deterministic synthetic weights (BN folded; stem in im2col layout)."""
    k1, k2, k3, k4 = jax.random.split(key, 4)
    w1 = 0.1 * jax.random.normal(k1, (c1, 9 * cin), jnp.float32)   # 3x3 stem
    b1 = 0.05 * jax.random.normal(k2, (c1, 1), jnp.float32)
    w2 = 0.1 * jax.random.normal(k3, (cout, c1), jnp.float32)      # 1x1 head
    b2 = 0.05 * jax.random.normal(k4, (cout, 1), jnp.float32)
    return w1, b1, w2, b2


def _reference_forward(x, params1, params2):
    """Pure-JAX reference of the same math (unfused) for correctness check."""
    N, Cin, H, W = x.shape
    patches = lax.conv_general_dilated_patches(
        x.astype(jnp.float32), (3, 3), (1, 1), "SAME",
        dimension_numbers=("NCHW", "OIHW", "NCHW"),
        precision=lax.Precision.HIGHEST).reshape(N, 9 * Cin, H * W)

    def one_model(w1, b1, w2, b2):
        h = jnp.einsum("ck,nkp->ncp", w1, patches,
                       precision=lax.Precision.HIGHEST) + b1[None]
        h = h * jax.nn.sigmoid(h)
        o = jnp.einsum("oc,ncp->nop", w2, h,
                       precision=lax.Precision.HIGHEST) + b2[None]
        return o.reshape(N, -1, H, W)

    return one_model(*params1), one_model(*params2)


if __name__ == "__main__":
    key = jax.random.PRNGKey(0)
    kx, kp1, kp2 = jax.random.split(key, 3)

    # Small shapes consistent with an NCHW image input.
    N, Cin, H, W = 2, 4, 16, 16
    C1 = 8          # hidden channels of the BaseConv stem
    COUT1 = 7       # "hat" head:     4 box + 1 obj + 2 classes
    COUT2 = 8       # "clothes" head: 4 box + 1 obj + 3 classes

    x = jax.random.normal(kx, (N, Cin, H, W), jnp.float32)
    params1 = _make_params(kp1, Cin, C1, COUT1)
    params2 = _make_params(kp2, Cin, C1, COUT2)

    # Weight fusion done once, outside the per-call forward path.
    fused = jax.block_until_ready(fuse_params(params1, params2))

    out1, out2 = load_model_forward(x, *fused, cout1=COUT1, cout2=COUT2)
    jax.block_until_ready((out1, out2))

    assert out1.shape == (N, COUT1, H, W)
    assert out2.shape == (N, COUT2, H, W)

    # Numerical check against the pure-JAX reference (tolerance covers MXU
    # bf16-pass rounding differences between XLA and Mosaic matmuls).
    ref1, ref2 = _reference_forward(x, params1, params2)
    assert bool(jnp.allclose(out1, ref1, atol=2e-2, rtol=2e-2))
    assert bool(jnp.allclose(out2, ref2, atol=2e-2, rtol=2e-2))

    print("KERNEL_OK")
</pallas_src>

<mosaic_0001>
module attributes {stable_mosaic.version = 11 : i64} {
  func.func @_fused_two_model_kernel(%arg0: i32, %arg1: memref<2x36x256xf32, #tpu.memory_space<vmem>>, %arg2: memref<16x36xf32, #tpu.memory_space<vmem>>, %arg3: memref<16x1xf32, #tpu.memory_space<vmem>>, %arg4: memref<16x16xf32, #tpu.memory_space<vmem>>, %arg5: memref<16x1xf32, #tpu.memory_space<vmem>>, %arg6: memref<2x7x256xf32, #tpu.memory_space<vmem>>, %arg7: memref<2x8x256xf32, #tpu.memory_space<vmem>>) attributes {dimension_semantics = [#tpu.dimension_semantics<arbitrary>], iteration_bounds = array<i64: 1>, scalar_prefetch = 0 : i64, scratch_operands = 0 : i64, tpu.core_type = #tpu.core_type<tc>, window_params = [{pipeline_mode = #tpu.pipeline_mode<synchronous>, transform_indices = @transform_0, window_bounds = array<i64: 2, 36, 256>}, {pipeline_mode = #tpu.pipeline_mode<synchronous>, transform_indices = @transform_1, window_bounds = array<i64: 16, 36>}, {pipeline_mode = #tpu.pipeline_mode<synchronous>, transform_indices = @transform_2, window_bounds = array<i64: 16, 1>}, {pipeline_mode = #tpu.pipeline_mode<synchronous>, transform_indices = @transform_3, window_bounds = array<i64: 16, 16>}, {pipeline_mode = #tpu.pipeline_mode<synchronous>, transform_indices = @transform_4, window_bounds = array<i64: 16, 1>}, {pipeline_mode = #tpu.pipeline_mode<synchronous>, transform_indices = @transform_5, window_bounds = array<i64: 2, 7, 256>}, {pipeline_mode = #tpu.pipeline_mode<synchronous>, transform_indices = @transform_6, window_bounds = array<i64: 2, 8, 256>}]} {
    %c0 = arith.constant 0 : index
    %c0_0 = arith.constant 0 : index
    %c0_1 = arith.constant 0 : index
    %0 = vector.load %arg1[%c0, %c0_0, %c0_1] : memref<2x36x256xf32, #tpu.memory_space<vmem>>, vector<1x36x256xf32>
    %1 = vector.shape_cast %0 : vector<1x36x256xf32> to vector<36x256xf32>
    %c1 = arith.constant 1 : index
    %c0_2 = arith.constant 0 : index
    %c0_3 = arith.constant 0 : index
    %2 = vector.load %arg1[%c1, %c0_2, %c0_3] : memref<2x36x256xf32, #tpu.memory_space<vmem>>, vector<1x36x256xf32>
    %3 = vector.shape_cast %2 : vector<1x36x256xf32> to vector<36x256xf32>
    %4 = tpu.concatenate %1, %3 in 1 : vector<36x256xf32>, vector<36x256xf32> -> vector<36x512xf32>
    %c0_4 = arith.constant 0 : index
    %c0_5 = arith.constant 0 : index
    %5 = vector.load %arg2[%c0_4, %c0_5] : memref<16x36xf32, #tpu.memory_space<vmem>>, vector<16x36xf32>
    %cst = arith.constant dense<0.000000e+00> : vector<16x512xf32>
    %6 = tpu.matmul %5, %4, %cst {dimension_numbers = #tpu.dot_dimension_numbers<[1], [0], [0], [1], [0, 0, 1, 1], [], []>} : vector<16x36xf32>, vector<36x512xf32>, vector<16x512xf32> -> vector<16x512xf32>
    %c0_6 = arith.constant 0 : index
    %c0_7 = arith.constant 0 : index
    %7 = vector.load %arg3[%c0_6, %c0_7] : memref<16x1xf32, #tpu.memory_space<vmem>>, vector<16x1xf32>
    %8 = vector.broadcast %7 : vector<16x1xf32> to vector<16x512xf32>
    %9 = arith.addf %6, %8 : vector<16x512xf32>
    %cst_8 = arith.constant 5.000000e-01 : f32
    %10 = vector.broadcast %cst_8 : f32 to vector<16x512xf32>
    %11 = arith.mulf %10, %9 : vector<16x512xf32>
    %12 = math.tanh %11 : vector<16x512xf32>
    %cst_9 = arith.constant 5.000000e-01 : f32
    %13 = vector.broadcast %cst_9 : f32 to vector<16x512xf32>
    %14 = arith.mulf %13, %12 : vector<16x512xf32>
    %cst_10 = arith.constant 5.000000e-01 : f32
    %15 = vector.broadcast %cst_10 : f32 to vector<16x512xf32>
    %16 = arith.addf %14, %15 : vector<16x512xf32>
    %17 = arith.mulf %9, %16 : vector<16x512xf32>
    %c0_11 = arith.constant 0 : index
    %c0_12 = arith.constant 0 : index
    %18 = vector.load %arg4[%c0_11, %c0_12] : memref<16x16xf32, #tpu.memory_space<vmem>>, vector<16x16xf32>
    %cst_13 = arith.constant dense<0.000000e+00> : vector<16x512xf32>
    %19 = tpu.matmul %18, %17, %cst_13 {dimension_numbers = #tpu.dot_dimension_numbers<[1], [0], [0], [1], [0, 0, 1, 1], [], []>} : vector<16x16xf32>, vector<16x512xf32>, vector<16x512xf32> -> vector<16x512xf32>
    %c0_14 = arith.constant 0 : index
    %c0_15 = arith.constant 0 : index
    %20 = vector.load %arg5[%c0_14, %c0_15] : memref<16x1xf32, #tpu.memory_space<vmem>>, vector<16x1xf32>
    %21 = vector.broadcast %20 : vector<16x1xf32> to vector<16x512xf32>
    %22 = arith.addf %19, %21 : vector<16x512xf32>
    %23 = vector.extract_strided_slice %22 {offsets = [0, 0], sizes = [7, 256], strides = [1, 1]} : vector<16x512xf32> to vector<7x256xf32>
    %c0_16 = arith.constant 0 : index
    %c0_17 = arith.constant 0 : index
    %c0_18 = arith.constant 0 : index
    %24 = vector.load %arg6[%c0_16, %c0_17, %c0_18] : memref<2x7x256xf32, #tpu.memory_space<vmem>>, vector<1x7x256xf32>
    %25 = vector.shape_cast %24 : vector<1x7x256xf32> to vector<7x256xf32>
    %26 = vector.shape_cast %23 : vector<7x256xf32> to vector<1x7x256xf32>
    tpu.vector_store %arg6[%c0_16, %c0_17, %c0_18], %26 {strides = array<i32>} : memref<2x7x256xf32, #tpu.memory_space<vmem>>, vector<1x7x256xf32>,
    %27 = vector.extract_strided_slice %22 {offsets = [8, 0], sizes = [8, 256], strides = [1, 1]} : vector<16x512xf32> to vector<8x256xf32>
    %c0_19 = arith.constant 0 : index
    %c0_20 = arith.constant 0 : index
    %c0_21 = arith.constant 0 : index
    %28 = vector.load %arg7[%c0_19, %c0_20, %c0_21] : memref<2x8x256xf32, #tpu.memory_space<vmem>>, vector<1x8x256xf32>
    %29 = vector.shape_cast %28 : vector<1x8x256xf32> to vector<8x256xf32>
    %30 = vector.shape_cast %27 : vector<8x256xf32> to vector<1x8x256xf32>
    tpu.vector_store %arg7[%c0_19, %c0_20, %c0_21], %30 {strides = array<i32>} : memref<2x8x256xf32, #tpu.memory_space<vmem>>, vector<1x8x256xf32>,
    %31 = vector.extract_strided_slice %22 {offsets = [0, 256], sizes = [7, 256], strides = [1, 1]} : vector<16x512xf32> to vector<7x256xf32>
    %c1_22 = arith.constant 1 : index
    %c0_23 = arith.constant 0 : index
    %c0_24 = arith.constant 0 : index
    %32 = vector.load %arg6[%c1_22, %c0_23, %c0_24] : memref<2x7x256xf32, #tpu.memory_space<vmem>>, vector<1x7x256xf32>
    %33 = vector.shape_cast %32 : vector<1x7x256xf32> to vector<7x256xf32>
    %34 = vector.shape_cast %31 : vector<7x256xf32> to vector<1x7x256xf32>
    tpu.vector_store %arg6[%c1_22, %c0_23, %c0_24], %34 {strides = array<i32>} : memref<2x7x256xf32, #tpu.memory_space<vmem>>, vector<1x7x256xf32>,
    %35 = vector.extract_strided_slice %22 {offsets = [8, 256], sizes = [8, 256], strides = [1, 1]} : vector<16x512xf32> to vector<8x256xf32>
    %c1_25 = arith.constant 1 : index
    %c0_26 = arith.constant 0 : index
    %c0_27 = arith.constant 0 : index
    %36 = vector.load %arg7[%c1_25, %c0_26, %c0_27] : memref<2x8x256xf32, #tpu.memory_space<vmem>>, vector<1x8x256xf32>
    %37 = vector.shape_cast %36 : vector<1x8x256xf32> to vector<8x256xf32>
    %38 = vector.shape_cast %35 : vector<8x256xf32> to vector<1x8x256xf32>
    tpu.vector_store %arg7[%c1_25, %c0_26, %c0_27], %38 {strides = array<i32>} : memref<2x8x256xf32, #tpu.memory_space<vmem>>, vector<1x8x256xf32>,
    return
  }
  func.func @transform_0(%arg0: i32) -> (i32, i32, i32) {
    %c0_i32 = arith.constant 0 : i32
    %c0_i32_0 = arith.constant 0 : i32
    %c0_i32_1 = arith.constant 0 : i32
    %c0_i32_2 = arith.constant 0 : i32
    return %c0_i32, %c0_i32_0, %c0_i32_1 : i32, i32, i32
  }
  func.func @transform_1(%arg0: i32) -> (i32, i32) {
    %c0_i32 = arith.constant 0 : i32
    %c0_i32_0 = arith.constant 0 : i32
    %c0_i32_1 = arith.constant 0 : i32
    return %c0_i32, %c0_i32_0 : i32, i32
  }
  func.func @transform_2(%arg0: i32) -> (i32, i32) {
    %c0_i32 = arith.constant 0 : i32
    %c0_i32_0 = arith.constant 0 : i32
    %c0_i32_1 = arith.constant 0 : i32
    return %c0_i32, %c0_i32_0 : i32, i32
  }
  func.func @transform_3(%arg0: i32) -> (i32, i32) {
    %c0_i32 = arith.constant 0 : i32
    %c0_i32_0 = arith.constant 0 : i32
    %c0_i32_1 = arith.constant 0 : i32
    return %c0_i32, %c0_i32_0 : i32, i32
  }
  func.func @transform_4(%arg0: i32) -> (i32, i32) {
    %c0_i32 = arith.constant 0 : i32
    %c0_i32_0 = arith.constant 0 : i32
    %c0_i32_1 = arith.constant 0 : i32
    return %c0_i32, %c0_i32_0 : i32, i32
  }
  func.func @transform_5(%arg0: i32) -> (i32, i32, i32) {
    %c0_i32 = arith.constant 0 : i32
    %c0_i32_0 = arith.constant 0 : i32
    %c0_i32_1 = arith.constant 0 : i32
    %c0_i32_2 = arith.constant 0 : i32
    return %c0_i32, %c0_i32_0, %c0_i32_1 : i32, i32, i32
  }
  func.func @transform_6(%arg0: i32) -> (i32, i32, i32) {
    %c0_i32 = arith.constant 0 : i32
    %c0_i32_0 = arith.constant 0 : i32
    %c0_i32_1 = arith.constant 0 : i32
    %c0_i32_2 = arith.constant 0 : i32
    return %c0_i32, %c0_i32_0, %c0_i32_1 : i32, i32, i32
  }
}

</mosaic_0001>

<bundles_post_ra>
// kernel: load_model_forward.1
= control target key start
LH: loop header
LB: loop body
LE: loop exit
PB: predicated region body
PF: predicated region fallthrough
CT: control target
= control target key end

     0   :  { %vm64_vm0 = vcmask 1043456   ;;  %v393_v3 = vmov 0   ;;  %vm57_vm1 = vcmask 293888   ;;  %vm223_vm2 = vcmask 130048   ;;  %s561_s0 = inlined_call_operand.vmem [shape: f32[2,36,256], index: 0, kind: input, shape index: {}]   ;;  %s562_s1 = inlined_call_operand.vmem [shape: f32[16,36], index: 1, kind: input, shape index: {}]   ;;  %s563_s2 = inlined_call_operand.vmem [shape: f32[16,1], index: 2, kind: input, shape index: {}]   ;;  %s564_s4 = inlined_call_operand.vmem [shape: f32[16,1], index: 4, kind: input, shape index: {}]   ;;  %s565_s3 = inlined_call_operand.vmem [shape: f32[16,16], index: 3, kind: input, shape index: {}]   ;;  %s566_s5 = inlined_call_operand.vmem [shape: f32[2,7,256], index: 5, kind: output, shape index: {0}]   ;;  %s567_s6 = inlined_call_operand.vmem [shape: f32[2,8,256], index: 6, kind: output, shape index: {1}]  }
   0x1   :  { %v30_v0 = vld [vmem:[%s561_s0 + $0x40] sm:$0xf]  ;;  %v31_v1 = vld [vmem:[%s561_s0 + $0x48] sm:$0xf]  ;;  %v348_v2 = vld [vmem:[%s561_s0 + $0x90] sm:$0xf]  ;;  %375 = vset.pattern.permute.xlu0 %v393_v3  ;;  %376 = vset.pattern.permute.xlu1 %v393_v3 }
   0x2   :  { %350 = vmatpush.msk.msra.mxu0 %vm64_vm0, %v30_v0  ;;  %353 = vmatpush.msk.msra.mxu1 %vm64_vm0, %v31_v1  ;;  %v349_v4 = vld [vmem:[%s561_s0 + $0x98] sm:$0xf]  ;;  %v28_v5 = vld [vmem:[%s561_s0 + $0x30] sm:$0xff]  ;;  %v346_v7 = vld [vmem:[%s561_s0 + $0x80] sm:$0xff] }
   0x3   :  { %v29_v6 = vld [vmem:[%s561_s0 + $0x38] sm:$0xff]  ;;  %356 = vmatpush.msk.msra.mxu2 %vm64_vm0, %v348_v2  ;;  %359 = vmatpush.msk.msra.mxu3 %vm64_vm0, %v349_v4  ;;  %v347_v8 = vld [vmem:[%s561_s0 + $0x88] sm:$0xff]  ;;  %v26_v9 = vld [vmem:[%s561_s0 + $0x20] sm:$0xff] }
   0x4   :  { %89 = vmatpush.msra.mxu0 %v28_v5  ;;  %112 = vmatpush.msra.mxu1 %v29_v6  ;;  %v27_v10 = vld [vmem:[%s561_s0 + $0x28] sm:$0xff]  ;;  %v344_v11 = vld [vmem:[%s561_s0 + $0x70] sm:$0xff]  ;;  %v345_v12 = vld [vmem:[%s561_s0 + $0x78] sm:$0xff] }
   0x5   :  { %135 = vmatpush.msra.mxu2 %v346_v7  ;;  %158 = vmatpush.msra.mxu3 %v347_v8  ;;  %v24_v13 = vld [vmem:[%s561_s0 + $0x10] sm:$0xff]  ;;  %v25_v14 = vld [vmem:[%s561_s0 + $0x18] sm:$0xff]  ;;  %v342_v15 = vld [vmem:[%s561_s0 + $0x60] sm:$0xff] }
   0x6   :  { %90 = vmatpush.msra.mxu0 %v26_v9  ;;  %113 = vmatpush.msra.mxu1 %v27_v10  ;;  %v343_v16 = vld [vmem:[%s561_s0 + $0x68] sm:$0xff]  ;;  %v22_v17 = vld [vmem:[%s561_s0] sm:$0xff]  ;;  %v340_v19 = vld [vmem:[%s561_s0 + $0x50] sm:$0xff] }
   0x7   :  { %136 = vmatpush.msra.mxu2 %v344_v11  ;;  %159 = vmatpush.msra.mxu3 %v345_v12  ;;  %v23_v18 = vld [vmem:[%s561_s0 + $0x8] sm:$0xff]  ;;  %v341_v20 = vld [vmem:[%s561_s0 + $0x58] sm:$0xff]  ;;  %v43_v21 = vld [vmem:[%s562_s1] sm:$0xff] }
   0x8   :  { %91 = vmatpush.msra.mxu0 %v24_v13  ;;  %114 = vmatpush.msra.mxu1 %v25_v14  ;;  %v46_v22 = vld [vmem:[%s563_s2 + $0x8] sm:$0xff]  ;;  %v45_v24 = vld [vmem:[%s563_s2] sm:$0xff] }
   0x9   :  { %137 = vmatpush.msra.mxu2 %v342_v15  ;;  %160 = vmatpush.msra.mxu3 %v343_v16  ;;  %v44_v23 = vld [vmem:[%s562_s1 + $0x8] sm:$0xff]  ;;  %v211_v45 = vld [vmem:[%s564_s4] sm:$0xff] }
   0xa   :  { %92 = vmatpush.msra.mxu0 %v22_v17  ;;  %115 = vmatpush.msra.mxu1 %v23_v18  ;;  %v212_v55 = vld [vmem:[%s564_s4 + $0x8] sm:$0xff]  ;;  %v209_v11 = vld [vmem:[%s565_s3] sm:$0xff] }
   0xb   :  { %138 = vmatpush.msra.mxu2 %v340_v19  ;;  %161 = vmatpush.msra.mxu3 %v341_v20 }
   0xc   :  { %351 = vmatmul.msk.f32.vlgmr.msra.gmra.mxu0 %vm57_vm1, %v43_v21  ;;  %354 = vmatmul.msk.f32.vlgmr.msra.gmra.mxu1 %vm57_vm1, %v43_v21 }
   0xd   :  { %357 = vmatmul.msk.f32.vlgmr.msra.gmra.mxu2 %vm57_vm1, %v43_v21  ;;  %360 = vmatmul.msk.f32.vlgmr.msra.gmra.mxu3 %vm57_vm1, %v43_v21 }
   0xe   :  { %54 = vperm.xlu0 %375, %v46_v22   ;;  %215 = vperm.xlu1 %376, %v211_v45   ;;  %v210_v22 = vld [vmem:[%s565_s3 + $0x8] sm:$0xff] }
  0x14   :  { %352 = vmatmul.msk.f32.gmra.mxu0 %vm57_vm1, %v44_v23  ;;  %355 = vmatmul.msk.f32.gmra.mxu1 %vm57_vm1, %v44_v23 }
  0x15   :  { %358 = vmatmul.msk.f32.gmra.mxu2 %vm57_vm1, %v44_v23  ;;  %361 = vmatmul.msk.f32.gmra.mxu3 %vm57_vm1, %v44_v23 }
  0x16   :  { %49 = vperm.xlu0 %375, %v45_v24   ;;  %220 = vperm.xlu1 %376, %v212_v55  }
  0x80   :  { %v55_v25 = vpop.permute.xlu0 %54  ;;  %v216_v23 = vpop.permute.xlu1 %215 }
  0x88   :  { %v50_v26 = vpop.permute.xlu0 %49 }
  0x89   :  { %v94_v27 = vpop.f32.mrf.mxu0  ;;  %v117_v28 = vpop.f32.mrf.mxu1 }
  0x8a   :  { %v95_v29 = vadd.f32 %v94_v27, %v50_v26  ;;  %v118_v30 = vadd.f32 %v117_v28, %v50_v26  ;;  %v221_v28 = vpop.permute.xlu1 %220 }
  0x8c   :  { %v169_v31 = vmul.f32 0.5, %v95_v29  ;;  %v170_v32 = vmul.f32 0.5, %v118_v30 }
  0x8e   :  { %377 = vtanh.f32 %v169_v31 }
  0x8f   :  { %379 = vtanh.f32 %v170_v32 }
  0x90   :  { %v140_v33 = vpop.f32.mrf.mxu2  ;;  %v163_v34 = vpop.f32.mrf.mxu3 }
  0x91   :  { %v509_v35 = vadd.f32 %v140_v33, %v50_v26  ;;  %v97_v36 = vpop.f32.mrf.mxu0  ;;  %v120_v37 = vpop.f32.mrf.mxu1  ;;  %v511_v38 = vadd.f32 %v163_v34, %v50_v26 }
  0x92   :  { %v98_v39 = vadd.f32 %v97_v36, %v55_v25  ;;  %v121_v40 = vadd.f32 %v120_v37, %v55_v25 }
  0x93   :  { %v171_v43 = vmul.f32 0.5, %v509_v35  ;;  %v172_v44 = vmul.f32 0.5, %v511_v38 }
  0x94   :  { %v173_v41 = vmul.f32 0.5, %v98_v39  ;;  %v174_v42 = vmul.f32 0.5, %v121_v40  ;;  %v378_v48 = vpop.eup %377 }
  0x95   :  { %v380_v51 = vpop.eup %379  ;;  %v185_v54 = vmul.f32 0.5, %v378_v48 }
  0x96   :  { %381 = vtanh.f32 %v173_v41  ;;  %v186_v57 = vmul.f32 0.5, %v380_v51 }
  0x97   :  { %383 = vtanh.f32 %v174_v42  ;;  %v193_v0 = vadd.f32 0.5, %v185_v54 }
  0x98   :  { %v143_v46 = vpop.f32.mrf.mxu2  ;;  %v166_v47 = vpop.f32.mrf.mxu3  ;;  %385 = vtanh.f32 %v171_v43  ;;  %v194_v2 = vadd.f32 0.5, %v186_v57 }
  0x99   :  { %v144_v49 = vadd.f32 %v143_v46, %v55_v25  ;;  %v167_v50 = vadd.f32 %v166_v47, %v55_v25  ;;  %387 = vtanh.f32 %v172_v44  ;;  %v201_v9 = vmul.f32 %v193_v0, %v95_v29 }
  0x9a   :  { %v202_v12 = vmul.f32 %v194_v2, %v118_v30 }
  0x9b   :  { %v175_v52 = vmul.f32 0.5, %v144_v49  ;;  %v176_v53 = vmul.f32 0.5, %v167_v50 }
  0x9c   :  { %v382_v56 = vpop.eup %381 }
  0x9d   :  { %389 = vtanh.f32 %v175_v52  ;;  %v384_v58 = vpop.eup %383  ;;  %v189_v59 = vmul.f32 0.5, %v382_v56 }
  0x9e   :  { %391 = vtanh.f32 %v176_v53  ;;  %v386_v60 = vpop.eup %385  ;;  %v190_v61 = vmul.f32 0.5, %v384_v58 }
  0x9f   :  { %v388_v62 = vpop.eup %387  ;;  %v197_v63 = vadd.f32 0.5, %v189_v59  ;;  %v187_v4 = vmul.f32 0.5, %v386_v60 }
  0xa0   :  { %v198_v1 = vadd.f32 0.5, %v190_v61  ;;  %v188_v7 = vmul.f32 0.5, %v388_v62 }
  0xa1   :  { %v205_v3 = vmul.f32 %v197_v63, %v98_v39  ;;  %v195_v15 = vadd.f32 0.5, %v187_v4 }
  0xa2   :  { %v206_v6 = vmul.f32 %v198_v1, %v121_v40  ;;  %v196_v17 = vadd.f32 0.5, %v188_v7 }
  0xa3   :  { %v390_v5 = vpop.eup %389  ;;  %244 = vmatpush.msrb.mxu0 %v205_v3  ;;  %v203_v20 = vmul.f32 %v195_v15, %v509_v35 }
  0xa4   :  { %v392_v8 = vpop.eup %391  ;;  %v191_v10 = vmul.f32 0.5, %v390_v5  ;;  %267 = vmatpush.msrb.mxu1 %v206_v6  ;;  %v204_v21 = vmul.f32 %v196_v17, %v511_v38 }
  0xa5   :  { %v192_v13 = vmul.f32 0.5, %v392_v8  ;;  %245 = vmatpush.msrb.mxu0 %v201_v9 }
  0xa6   :  { %v199_v14 = vadd.f32 0.5, %v191_v10  ;;  %268 = vmatpush.msrb.mxu1 %v202_v12  ;;  %362 = vmatmul.msk.f32.vlgmr.msrb.gmra.mxu0 %vm223_vm2, %v209_v11 }
  0xa7   :  { %v200_v16 = vadd.f32 0.5, %v192_v13  ;;  %364 = vmatmul.msk.f32.vlgmr.msrb.gmra.mxu1 %vm223_vm2, %v209_v11 }
  0xa8   :  { %v207_v18 = vmul.f32 %v199_v14, %v144_v49 }
  0xa9   :  { %v208_v19 = vmul.f32 %v200_v16, %v167_v50 }
  0xaa   :  { %290 = vmatpush.msrb.mxu2 %v207_v18 }
  0xab   :  { %313 = vmatpush.msrb.mxu3 %v208_v19 }
  0xac   :  { %291 = vmatpush.msrb.mxu2 %v203_v20 }
  0xad   :  { %314 = vmatpush.msrb.mxu3 %v204_v21  ;;  %366 = vmatmul.msk.f32.vlgmr.msrb.gmra.mxu2 %vm223_vm2, %v209_v11 }
  0xae   :  { %368 = vmatmul.msk.f32.vlgmr.msrb.gmra.mxu3 %vm223_vm2, %v209_v11  ;;  %363 = vmatmul.msk.f32.gmra.mxu0 %vm223_vm2, %v210_v22 }
  0xaf   :  { %365 = vmatmul.msk.f32.gmra.mxu1 %vm223_vm2, %v210_v22 }
  0xb5   :  { %367 = vmatmul.msk.f32.gmra.mxu2 %vm223_vm2, %v210_v22 }
  0xb6   :  { %369 = vmatmul.msk.f32.gmra.mxu3 %vm223_vm2, %v210_v22 }
 0x123   :  { %v247_v24 = vpop.f32.mrf.mxu0 }
 0x124   :  { %v248_v25 = vadd.f32 %v247_v24, %v216_v23  ;;  %v270_v26 = vpop.f32.mrf.mxu1 }
 0x125   :  { %v271_v27 = vadd.f32 %v270_v26, %v216_v23 }
 0x126   :  { %322 = vst [vmem:[%s566_s5] sm:$0x7f] %v248_v25 }
 0x127   :  { %323 = vst [vmem:[%s566_s5 + $0x8] sm:$0x7f] %v271_v27 }
 0x12b   :  { %v250_v29 = vpop.f32.mrf.mxu0 }
 0x12c   :  { %v251_v30 = vadd.f32 %v250_v29, %v221_v28  ;;  %v273_v31 = vpop.f32.mrf.mxu1 }
 0x12d   :  { %v274_v32 = vadd.f32 %v273_v31, %v221_v28 }
 0x12e   :  { %324 = vst [vmem:[%s567_s6] sm:$0xff] %v251_v30 }
 0x12f   :  { %325 = vst [vmem:[%s567_s6 + $0x8] sm:$0xff] %v274_v32 }
 0x130   :  { %v293_v33 = vpop.f32.mrf.mxu2 }
 0x131   :  { %v294_v34 = vadd.f32 %v293_v33, %v216_v23  ;;  %v316_v35 = vpop.f32.mrf.mxu3 }
 0x132   :  { %v317_v36 = vadd.f32 %v316_v35, %v216_v23 }
 0x133   :  { %370 = vst [vmem:[%s566_s5 + $0x10] sm:$0x7f] %v294_v34 }
 0x134   :  { %371 = vst [vmem:[%s566_s5 + $0x18] sm:$0x7f] %v317_v36 }
 0x138   :  { %v296_v37 = vpop.f32.mrf.mxu2 }
 0x139   :  { %v297_v38 = vadd.f32 %v296_v37, %v221_v28  ;;  %v319_v39 = vpop.f32.mrf.mxu3 }
 0x13a   :  { %v320_v40 = vadd.f32 %v319_v39, %v221_v28 }
 0x13b   :  { %372 = vst [vmem:[%s567_s6 + $0x10] sm:$0xff] %v297_v38 }
 0x13c   :  { %373 = vst [vmem:[%s567_s6 + $0x18] sm:$0xff] %v320_v40 }

</bundles_post_ra>
